<compile_context>
chip_gen: v7x
topology: tpu7x:2x2x1
jax: 0.10.0
libtpu: 0.0.40
codegen_flags: <defaults>
</compile_context>

<pallas_src>
import math
import jax
import jax.numpy as jnp
from jax.experimental import pallas as pl
from jax.experimental.pallas import tpu as pltpu


# ----------------------------------------------------------------------------
# One-time parameter packing (hoisted out of the per-step forward).
# ----------------------------------------------------------------------------
def pack_params(params):
    H4, _ = params["weight_ih"].shape
    H = H4 // 4
    return {
        "w_ih_t": params["weight_ih"].T,                                    # (In, 4H)
        "w_hh_t": params["weight_hh"].T,                                    # (H, 4H)
        "bias": (params["bias_ih"] + params["bias_hh"]).reshape(1, 4 * H),  # (1, 4H)
        "w_conv": params["conv_w"].reshape(1, H),                           # (1, H) row
        "b_conv": params["conv_b"].reshape(1, 1),                           # scalar (SMEM)
    }


# ----------------------------------------------------------------------------
# Single-step kernel (matches Decoder.forward exactly).
# ----------------------------------------------------------------------------
def decoder_step_kernel(x_ref, h_ref, c_ref, wih_ref, whh_ref, b_ref,
                        wconv_ref, bconv_ref,
                        out_ref, hnext_ref, cnext_ref):
    H = h_ref.shape[1]

    # Two MXU dots (no VMEM pack/reload of [x|h]); bias added once.
    gates = (jnp.dot(x_ref[...], wih_ref[...], preferred_element_type=jnp.float32)
             + jnp.dot(h_ref[...], whh_ref[...], preferred_element_type=jnp.float32)
             + b_ref[...])

    # One sigmoid pass over the whole (B, 4H) vreg; tanh only on the cell gate.
    sig = jax.nn.sigmoid(gates)
    i_g = sig[:, 0 * H:1 * H]
    f_g = sig[:, 1 * H:2 * H]
    o_g = sig[:, 3 * H:4 * H]
    g_g = jnp.tanh(gates[:, 2 * H:3 * H])

    c_next = f_g * c_ref[...] + i_g * g_g
    h_next = o_g * jnp.tanh(c_next)
    cnext_ref[...] = c_next
    hnext_ref[...] = h_next

    # Decoder head: Dropout(identity) -> ReLU -> Conv1d(H,1,k=1) -> Sigmoid.
    # Lane-dense (1, B) logit row: (1,H) . relu(h)^T via dot_general (contract last dims).
    relu_h = jnp.maximum(h_next, 0.0)
    logit = jax.lax.dot_general(wconv_ref[...], relu_h,
                                (((1,), (1,)), ((), ())),
                                preferred_element_type=jnp.float32) + bconv_ref[0, 0]
    out_ref[...] = jax.nn.sigmoid(logit)


def decoder_forward(x, h, c, packed):
    """x: (B, In), h/c: (B, H). Returns (out (B,1,1), (h_next, c_next))."""
    B, _ = x.shape
    H = h.shape[1]

    vmem = pl.BlockSpec(memory_space=pltpu.MemorySpace.VMEM)
    smem = pl.BlockSpec(memory_space=pltpu.MemorySpace.SMEM)

    out_row, h_next, c_next = pl.pallas_call(
        decoder_step_kernel,
        out_shape=(
            jax.ShapeDtypeStruct((1, B), jnp.float32),   # lane-dense logit row
            jax.ShapeDtypeStruct((B, H), jnp.float32),
            jax.ShapeDtypeStruct((B, H), jnp.float32),
        ),
        in_specs=[vmem, vmem, vmem, vmem, vmem, vmem, vmem, smem],
        out_specs=(vmem, vmem, vmem),
    )(x, h, c, packed["w_ih_t"], packed["w_hh_t"], packed["bias"],
      packed["w_conv"], packed["b_conv"])

    return out_row.reshape(B, 1, 1), (h_next, c_next)


# ----------------------------------------------------------------------------
# Fused sequence kernel: the whole T-step decode in one pallas_call.
# ----------------------------------------------------------------------------
def decoder_seq_kernel(x_ref, h0_ref, c0_ref, wih_ref, whh_ref, b_ref,
                       wconv_ref, bconv_ref,
                       out_ref, hn_ref, cn_ref,
                       xw_ref, hseq_ref):
    T, B, H = hseq_ref.shape

    # Hoist input projection AND bias out of the recurrence:
    # one (T*B, In) @ (In, 4H) MXU matmul + one bias add for the whole sequence.
    xw_ref[...] = (jnp.dot(x_ref[...], wih_ref[...],
                           preferred_element_type=jnp.float32)
                   + b_ref[...]).reshape(T, B, 4 * H)

    whh = whh_ref[...]      # loop-invariant, loaded once

    def step(t, carry):
        h, c = carry
        gates = xw_ref[t] + jnp.dot(h, whh, preferred_element_type=jnp.float32)
        sig = jax.nn.sigmoid(gates)                   # one EUP pass for i, f, o
        i_g = sig[:, 0 * H:1 * H]
        f_g = sig[:, 1 * H:2 * H]
        o_g = sig[:, 3 * H:4 * H]
        g_g = jnp.tanh(gates[:, 2 * H:3 * H])
        c_n = f_g * c + i_g * g_g
        h_n = o_g * jnp.tanh(c_n)
        hseq_ref[t] = h_n                             # per-step h into VMEM slab
        return (h_n, c_n)

    # Fully unrolled: T is static and the body is tiny / latency-bound.
    h_fin, c_fin = jax.lax.fori_loop(0, T, step, (h0_ref[...], c0_ref[...]),
                                     unroll=True)
    hn_ref[...] = h_fin
    cn_ref[...] = c_fin

    # Decoder head for ALL steps at once: ReLU -> 1x1 conv -> Sigmoid, emitted as a
    # single lane-dense (1, T*B) row (no masked (N,1) partial stores).
    relu_h = jnp.maximum(hseq_ref[...].reshape(T * B, H), 0.0)
    logit = jax.lax.dot_general(wconv_ref[...], relu_h,
                                (((1,), (1,)), ((), ())),
                                preferred_element_type=jnp.float32) + bconv_ref[0, 0]
    out_ref[...] = jax.nn.sigmoid(logit)


def decoder_sequence(x_seq, h0, c0, packed):
    """x_seq: (T, B, In). Returns (out (T,B,1,1), (h_T, c_T)) — Decoder applied T times."""
    T, B, In = x_seq.shape
    H = h0.shape[1]
    # Copy-free (T,B,.) <-> (T*B,.) reshapes require sublane-aligned B.
    assert B % 8 == 0, "decoder_sequence expects batch to be a multiple of 8 (sublanes)"

    x_flat = x_seq.reshape(T * B, In)   # flattened in the wrapper (outside the kernel)

    vmem = pl.BlockSpec(memory_space=pltpu.MemorySpace.VMEM)
    smem = pl.BlockSpec(memory_space=pltpu.MemorySpace.SMEM)

    out_row, h_n, c_n = pl.pallas_call(
        decoder_seq_kernel,
        out_shape=(
            jax.ShapeDtypeStruct((1, T * B), jnp.float32),   # lane-dense logit row
            jax.ShapeDtypeStruct((B, H), jnp.float32),
            jax.ShapeDtypeStruct((B, H), jnp.float32),
        ),
        in_specs=[vmem, vmem, vmem, vmem, vmem, vmem, vmem, smem],
        out_specs=(vmem, vmem, vmem),
        scratch_shapes=[
            pltpu.VMEM((T, B, 4 * H), jnp.float32),   # precomputed x @ W_ih + bias
            pltpu.VMEM((T, B, H), jnp.float32),       # per-step h for the conv head
        ],
    )(x_flat, h0, c0, packed["w_ih_t"], packed["w_hh_t"], packed["bias"],
      packed["w_conv"], packed["b_conv"])

    return out_row.reshape(T, B, 1, 1), (h_n, c_n)


# ----------------------------------------------------------------------------
# Parameter init (matches the PyTorch module's reset_parameters / Conv1d default).
# ----------------------------------------------------------------------------
def init_params(key, input_size, hidden_size):
    stdv = 1.0 / math.sqrt(hidden_size)
    ks = jax.random.split(key, 6)
    u = lambda k, shape, s: jax.random.uniform(k, shape, jnp.float32, -s, s)
    conv_s = 1.0 / math.sqrt(hidden_size)   # Conv1d fan_in = hidden * 1
    return {
        "weight_ih": u(ks[0], (4 * hidden_size, input_size), stdv),
        "weight_hh": u(ks[1], (4 * hidden_size, hidden_size), stdv),
        "bias_ih":   u(ks[2], (4 * hidden_size,), stdv),
        "bias_hh":   u(ks[3], (4 * hidden_size,), stdv),
        "conv_w":    u(ks[4], (1, hidden_size, 1), conv_s),
        "conv_b":    u(ks[5], (1,), conv_s),
    }


# ----------------------------------------------------------------------------
# Plain-JAX references (eval mode, same math as the PyTorch forward).
# ----------------------------------------------------------------------------
def _reference_step(x, h, c, params):
    H = h.shape[1]
    gates = (x @ params["weight_ih"].T + params["bias_ih"]
             + h @ params["weight_hh"].T + params["bias_hh"])
    i_g = jax.nn.sigmoid(gates[:, :H])
    f_g = jax.nn.sigmoid(gates[:, H:2 * H])
    g_g = jnp.tanh(gates[:, 2 * H:3 * H])
    o_g = jax.nn.sigmoid(gates[:, 3 * H:])
    c_n = f_g * c + i_g * g_g
    h_n = o_g * jnp.tanh(c_n)
    relu_h = jnp.maximum(h_n, 0.0)
    # 1x1 conv over a single spatial position == per-row dot product with the kernel row.
    logit = jnp.sum(relu_h * params["conv_w"].reshape(1, H), axis=-1, keepdims=True) \
        + params["conv_b"]
    return jax.nn.sigmoid(logit).reshape(-1, 1, 1), (h_n, c_n)


def _reference_sequence(x_seq, h0, c0, params):
    def scan_fn(carry, x_t):
        h, c = carry
        out, (h_n, c_n) = _reference_step(x_t, h, c, params)
        return (h_n, c_n), out
    (hT, cT), outs = jax.lax.scan(scan_fn, (h0, c0), x_seq)
    return outs, (hT, cT)   # outs: (T, B, 1, 1)


if __name__ == "__main__":
    B, In, Hd, T = 8, 32, 32, 16
    key = jax.random.PRNGKey(0)
    kx, kh, kc, kp = jax.random.split(key, 4)

    x_seq = jax.random.normal(kx, (T, B, In), jnp.float32)
    h0 = jax.random.normal(kh, (B, Hd), jnp.float32)
    c0 = jax.random.normal(kc, (B, Hd), jnp.float32)
    params = init_params(kp, In, Hd)
    packed = pack_params(params)          # one-time packing (hoisted out of the step)

    # --- single step (exact Decoder.forward semantics) ---
    out1, (h1, c1) = decoder_forward(x_seq[0], h0, c0, packed)
    jax.block_until_ready((out1, h1, c1))
    out1_r, (h1_r, c1_r) = _reference_step(x_seq[0], h0, c0, params)
    assert out1.shape == (B, 1, 1)
    assert jnp.allclose(out1, out1_r, atol=2e-5)
    assert jnp.allclose(h1, h1_r, atol=2e-5)
    assert jnp.allclose(c1, c1_r, atol=2e-5)

    # --- fused T-step decode (one pallas_call for the whole sequence) ---
    out_seq, (hT, cT) = decoder_sequence(x_seq, h0, c0, packed)
    jax.block_until_ready((out_seq, hT, cT))
    out_seq_r, (hT_r, cT_r) = _reference_sequence(x_seq, h0, c0, params)
    assert out_seq.shape == (T, B, 1, 1)
    assert jnp.allclose(out_seq, out_seq_r, atol=1e-4)
    assert jnp.allclose(hT, hT_r, atol=1e-4)
    assert jnp.allclose(cT, cT_r, atol=1e-4)

    print("KERNEL_OK")
</pallas_src>

<mosaic_0001>
module attributes {stable_mosaic.version = 11 : i64} {
  func.func @decoder_step_kernel(%arg0: memref<8x32xf32, #tpu.memory_space<vmem>>, %arg1: memref<8x32xf32, #tpu.memory_space<vmem>>, %arg2: memref<8x32xf32, #tpu.memory_space<vmem>>, %arg3: memref<32x128xf32, #tpu.memory_space<vmem>>, %arg4: memref<32x128xf32, #tpu.memory_space<vmem>>, %arg5: memref<1x128xf32, #tpu.memory_space<vmem>>, %arg6: memref<1x32xf32, #tpu.memory_space<vmem>>, %arg7: memref<1x1xf32, #tpu.memory_space<smem>>, %arg8: memref<1x8xf32, #tpu.memory_space<vmem>>, %arg9: memref<8x32xf32, #tpu.memory_space<vmem>>, %arg10: memref<8x32xf32, #tpu.memory_space<vmem>>) attributes {dimension_semantics = [], scalar_prefetch = 0 : i64, scratch_operands = 0 : i64, tpu.core_type = #tpu.core_type<tc>} {
    %c0 = arith.constant 0 : index
    %c0_0 = arith.constant 0 : index
    %0 = vector.load %arg0[%c0, %c0_0] : memref<8x32xf32, #tpu.memory_space<vmem>>, vector<8x32xf32>
    %c0_1 = arith.constant 0 : index
    %c0_2 = arith.constant 0 : index
    %1 = vector.load %arg3[%c0_1, %c0_2] : memref<32x128xf32, #tpu.memory_space<vmem>>, vector<32x128xf32>
    %cst = arith.constant dense<0.000000e+00> : vector<8x128xf32>
    %2 = tpu.matmul %0, %1, %cst {dimension_numbers = #tpu.dot_dimension_numbers<[1], [0], [0], [1], [0, 0, 1, 1], [], []>} : vector<8x32xf32>, vector<32x128xf32>, vector<8x128xf32> -> vector<8x128xf32>
    %c0_3 = arith.constant 0 : index
    %c0_4 = arith.constant 0 : index
    %3 = vector.load %arg1[%c0_3, %c0_4] : memref<8x32xf32, #tpu.memory_space<vmem>>, vector<8x32xf32>
    %c0_5 = arith.constant 0 : index
    %c0_6 = arith.constant 0 : index
    %4 = vector.load %arg4[%c0_5, %c0_6] : memref<32x128xf32, #tpu.memory_space<vmem>>, vector<32x128xf32>
    %cst_7 = arith.constant dense<0.000000e+00> : vector<8x128xf32>
    %5 = tpu.matmul %3, %4, %cst_7 {dimension_numbers = #tpu.dot_dimension_numbers<[1], [0], [0], [1], [0, 0, 1, 1], [], []>} : vector<8x32xf32>, vector<32x128xf32>, vector<8x128xf32> -> vector<8x128xf32>
    %6 = arith.addf %2, %5 : vector<8x128xf32>
    %c0_8 = arith.constant 0 : index
    %c0_9 = arith.constant 0 : index
    %7 = vector.load %arg5[%c0_8, %c0_9] : memref<1x128xf32, #tpu.memory_space<vmem>>, vector<1x128xf32>
    %8 = vector.broadcast %7 : vector<1x128xf32> to vector<8x128xf32>
    %9 = arith.addf %6, %8 : vector<8x128xf32>
    %10 = arith.negf %9 : vector<8x128xf32>
    %11 = math.exp %10 : vector<8x128xf32>
    %cst_10 = arith.constant 1.000000e+00 : f32
    %12 = vector.broadcast %cst_10 : f32 to vector<8x128xf32>
    %13 = arith.addf %12, %11 : vector<8x128xf32>
    %14 = arith.divf %12, %13 : vector<8x128xf32>
    %15 = vector.extract_strided_slice %14 {offsets = [0, 0], sizes = [8, 32], strides = [1, 1]} : vector<8x128xf32> to vector<8x32xf32>
    %16 = vector.extract_strided_slice %14 {offsets = [0, 32], sizes = [8, 32], strides = [1, 1]} : vector<8x128xf32> to vector<8x32xf32>
    %17 = vector.extract_strided_slice %14 {offsets = [0, 96], sizes = [8, 32], strides = [1, 1]} : vector<8x128xf32> to vector<8x32xf32>
    %18 = vector.extract_strided_slice %9 {offsets = [0, 64], sizes = [8, 32], strides = [1, 1]} : vector<8x128xf32> to vector<8x32xf32>
    %19 = math.tanh %18 : vector<8x32xf32>
    %c0_11 = arith.constant 0 : index
    %c0_12 = arith.constant 0 : index
    %20 = vector.load %arg2[%c0_11, %c0_12] : memref<8x32xf32, #tpu.memory_space<vmem>>, vector<8x32xf32>
    %21 = arith.mulf %16, %20 : vector<8x32xf32>
    %22 = arith.mulf %15, %19 : vector<8x32xf32>
    %23 = arith.addf %21, %22 : vector<8x32xf32>
    %24 = math.tanh %23 : vector<8x32xf32>
    %25 = arith.mulf %17, %24 : vector<8x32xf32>
    %c0_13 = arith.constant 0 : index
    %c0_14 = arith.constant 0 : index
    %26 = vector.load %arg10[%c0_13, %c0_14] : memref<8x32xf32, #tpu.memory_space<vmem>>, vector<8x32xf32>
    tpu.vector_store %arg10[%c0_13, %c0_14], %23 {strides = array<i32>} : memref<8x32xf32, #tpu.memory_space<vmem>>, vector<8x32xf32>,
    %c0_15 = arith.constant 0 : index
    %c0_16 = arith.constant 0 : index
    %27 = vector.load %arg9[%c0_15, %c0_16] : memref<8x32xf32, #tpu.memory_space<vmem>>, vector<8x32xf32>
    tpu.vector_store %arg9[%c0_15, %c0_16], %25 {strides = array<i32>} : memref<8x32xf32, #tpu.memory_space<vmem>>, vector<8x32xf32>,
    %cst_17 = arith.constant 0.000000e+00 : f32
    %28 = vector.broadcast %cst_17 : f32 to vector<8x32xf32>
    %29 = arith.maximumf %25, %28 : vector<8x32xf32>
    %c0_18 = arith.constant 0 : index
    %c0_19 = arith.constant 0 : index
    %30 = vector.load %arg6[%c0_18, %c0_19] : memref<1x32xf32, #tpu.memory_space<vmem>>, vector<1x32xf32>
    %cst_20 = arith.constant dense<0.000000e+00> : vector<1x8xf32>
    %31 = tpu.matmul %30, %29, %cst_20 {dimension_numbers = #tpu.dot_dimension_numbers<[1], [1], [0], [0], [0, 0, 1, 0], [], []>} : vector<1x32xf32>, vector<8x32xf32>, vector<1x8xf32> -> vector<1x8xf32>
    %c0_21 = arith.constant 0 : index
    %c0_22 = arith.constant 0 : index
    %32 = memref.load %arg7[%c0_21, %c0_22] : memref<1x1xf32, #tpu.memory_space<smem>>
    %33 = vector.broadcast %32 : f32 to vector<1x8xf32>
    %34 = arith.addf %31, %33 : vector<1x8xf32>
    %35 = arith.negf %34 : vector<1x8xf32>
    %36 = math.exp %35 : vector<1x8xf32>
    %cst_23 = arith.constant 1.000000e+00 : f32
    %37 = vector.broadcast %cst_23 : f32 to vector<1x8xf32>
    %38 = arith.addf %37, %36 : vector<1x8xf32>
    %39 = arith.divf %37, %38 : vector<1x8xf32>
    %c0_24 = arith.constant 0 : index
    %c0_25 = arith.constant 0 : index
    %40 = vector.load %arg8[%c0_24, %c0_25] : memref<1x8xf32, #tpu.memory_space<vmem>>, vector<1x8xf32>
    tpu.vector_store %arg8[%c0_24, %c0_25], %39 {strides = array<i32>} : memref<1x8xf32, #tpu.memory_space<vmem>>, vector<1x8xf32>,
    return
  }
}

</mosaic_0001>

<bundles_post_ra>
// kernel: tpu_custom_call.1
= control target key start
LH: loop header
LB: loop body
LE: loop exit
PB: predicated region body
PF: predicated region fallthrough
CT: control target
= control target key end

     0   :  { %17 = vsyncpa [#allocation4], 0  ;;  %s848_s0 = inlined_call_operand.hbm [shape: f32[8,32], index: 0, kind: input, shape index: {}]   ;;  %s849_s1 = inlined_call_operand.hbm [shape: f32[8,32], index: 1, kind: input, shape index: {}]   ;;  %s850_s2 = inlined_call_operand.vmem [shape: f32[8,32], index: 2, kind: input, shape index: {}]   ;;  %s851_s3 = inlined_call_operand.hbm [shape: f32[32,128], index: 3, kind: input, shape index: {}]   ;;  %s852_s4 = inlined_call_operand.hbm [shape: f32[32,128], index: 4, kind: input, shape index: {}]   ;;  %s853_s5 = inlined_call_operand.vmem [shape: f32[1,128], index: 5, kind: input, shape index: {}]   ;;  %s854_s6 = inlined_call_operand.vmem [shape: f32[1,32], index: 6, kind: input, shape index: {}]   ;;  %s855_s7 = inlined_call_operand.<no memory space> [shape: f32[1,1], index: 7, kind: input, shape index: {}]   ;;  %s856_s8 = inlined_call_operand.hbm [shape: f32[1,8], index: 8, kind: output, shape index: {0}]   ;;  %s857_s9 = inlined_call_operand.hbm [shape: f32[8,32], index: 9, kind: output, shape index: {1}]   ;;  %s858_s10 = inlined_call_operand.hbm [shape: f32[8,32], index: 10, kind: output, shape index: {2}]  }
   0x1   :  { %18 = vsyncpa [#allocation7], 0 }
   0x2   :  { %19 = vsyncpa [#allocation10], 0 }
   0x3   :  { %20 = vsyncpa [#allocation5], 0 }
   0x4   :  { %21 = vsyncpa [#allocation13], 0  ;;  %s673_s13 = smov [#allocation6]   ;;  %s674_s15 = smov [#allocation3]  }
   0x5   :  { %s38_s14 = sshll.u32 %s673_s13, 4  ;;  %s28_s16 = sshll.u32 %s674_s15, 4  ;;  %s39_s14 = int_to_ptr.vmem [resolvable:$true] %s38_s14  ;;  %s29_s16 = int_to_ptr.vmem [resolvable:$true] %s28_s16 }
   0x6   :  { %s509_s19 = scalar_lea.hbm %s849_s1, 128 }
   0x7   :  { %p510_p0 = scmp.ne.s32.totalorder %s849_s1, %s509_s19  ;;  %p513_p1 = scmp.lt.u32.totalorder %s509_s19, %s849_s1 }
   0x9   :  { %p515_p2 = pnand %p513_p1, %p510_p0 }
   0xb   :  { %518 = shalt.err (!%p515_p2)
}
   0xc   :  { %s519_s24 = scalar_lea.vmem %s39_s14, 128  ;;  %p524_p4 = scmp.lt.s32.totalorder %s39_s14, %s39_s14 }
   0xd   :  { %p520_p3 = scmp.ne.s32.totalorder %s39_s14, %s519_s24  ;;  %p525_p5 = scmp.lt.s32.totalorder %s519_s24, %s519_s24 }
   0xf   :  { %p526_p6 = por %p525_p5, %p524_p4 }
  0x11   :  { %p527_p7 = pnand %p526_p6, %p520_p3 }
  0x13   :  { %530 = shalt.err (!%p527_p7)
}
  0x14   :  { %41 = dma.hbm_to_vmem [thread:$0]  %s849_s1, 128, %s39_s14, [#allocation7]  }
  0x15   :  { %s531_s29 = scalar_lea.hbm %s848_s0, 128 }
  0x16   :  { %p532_p8 = scmp.ne.s32.totalorder %s848_s0, %s531_s29  ;;  %p535_p9 = scmp.lt.u32.totalorder %s531_s29, %s848_s0 }
  0x18   :  { %p537_p10 = pnand %p535_p9, %p532_p8 }
  0x1a   :  { %540 = shalt.err (!%p537_p10)
}
  0x1b   :  { %s541_s15 = scalar_lea.vmem %s29_s16, 128  ;;  %p546_p12 = scmp.lt.s32.totalorder %s29_s16, %s29_s16 }
  0x1c   :  { %p542_p11 = scmp.ne.s32.totalorder %s29_s16, %s541_s15  ;;  %p547_p13 = scmp.lt.s32.totalorder %s541_s15, %s541_s15 }
  0x1e   :  { %p548_p0 = por %p547_p13, %p546_p12 }
  0x20   :  { %p549_p1 = pnand %p548_p0, %p542_p11 }
  0x22   :  { %552 = shalt.err (!%p549_p1)
}
  0x23   :  { %31 = dma.hbm_to_vmem [thread:$0]  %s848_s0, 128, %s29_s16, [#allocation4]  }
  0x24   :  { %s675_s17 = smov [#allocation8]   ;;  %s553_s21 = scalar_lea.hbm %s851_s3, 512 }
  0x25   :  { %s49_s18 = sshll.u32 %s675_s17, 4  ;;  %p554_p2 = scmp.ne.s32.totalorder %s851_s3, %s553_s21  ;;  %s50_s18 = int_to_ptr.vmem [resolvable:$true] %s49_s18 }
  0x26   :  { %p557_p3 = scmp.lt.u32.totalorder %s553_s21, %s851_s3 }
  0x28   :  { %p559_p4 = pnand %p557_p3, %p554_p2 }
  0x2a   :  { %562 = shalt.err (!%p559_p4)
}
  0x2b   :  { %s563_s26 = scalar_lea.vmem %s50_s18, 512  ;;  %p568_p6 = scmp.lt.s32.totalorder %s50_s18, %s50_s18 }
  0x2c   :  { %p564_p5 = scmp.ne.s32.totalorder %s50_s18, %s563_s26  ;;  %p569_p7 = scmp.lt.s32.totalorder %s563_s26, %s563_s26 }
  0x2e   :  { %p570_p8 = por %p569_p7, %p568_p6 }
  0x30   :  { %p571_p9 = pnand %p570_p8, %p564_p5 }
  0x32   :  { %574 = shalt.err (!%p571_p9)
}
  0x33   :  { %s676_s0 = smov 128   ;;  %s677_s16 = smov 8  }
  0x34   :  { %55 = dma.hbm_to_vmem [thread:$0]  %s851_s3, 512, %s50_s18, [#allocation7], %s676_s0, %s676_s0, %s677_s16  }
  0x35   :  { %s678_s29 = smov [#allocation9]   ;;  %s575_s13 = scalar_lea.hbm %s852_s4, 512 }
  0x36   :  { %s61_s30 = sshll.u32 %s678_s29, 4  ;;  %p576_p10 = scmp.ne.s32.totalorder %s852_s4, %s575_s13  ;;  %s62_s30 = int_to_ptr.vmem [resolvable:$true] %s61_s30 }
  0x37   :  { %p579_p11 = scmp.lt.u32.totalorder %s575_s13, %s852_s4 }
  0x39   :  { %p581_p12 = pnand %p579_p11, %p576_p10 }
  0x3b   :  { %584 = shalt.err (!%p581_p12)
}
  0x3c   :  { %s585_s19 = scalar_lea.vmem %s62_s30, 512  ;;  %p590_p0 = scmp.lt.s32.totalorder %s62_s30, %s62_s30 }
  0x3d   :  { %p586_p13 = scmp.ne.s32.totalorder %s62_s30, %s585_s19  ;;  %p591_p1 = scmp.lt.s32.totalorder %s585_s19, %s585_s19 }
  0x3f   :  { %p592_p2 = por %p591_p1, %p590_p0 }
  0x41   :  { %p593_p3 = pnand %p592_p2, %p586_p13 }
  0x43   :  { %596 = shalt.err (!%p593_p3)
}
  0x44   :  { %67 = dma.hbm_to_vmem [thread:$0]  %s852_s4, 512, %s62_s30, [#allocation10], %s676_s0, %s676_s0, %s677_s16  }
  0x45   :  { %663 = dma.done.wait [#allocation4], 128  }
  0x46   :  { %664 = vsyncadd [#allocation4], 4294967168 }
  0x47   :  { %665 = dma.done.wait [#allocation7], 640  }
  0x48   :  { %666 = vsyncadd [#allocation7], 4294966656 }
  0x49   :  { %667 = dma.done.wait [#allocation10], 512  }
  0x4a   :  { %668 = vsyncadd [#allocation10], 4294966784  ;;  %v679_v0 = vmov 0.0|0.0   ;;  %vm680_vm0 = vmmov 0   ;;  %v681_v1 = vmov 0.0   ;;  %v92_v2 = vld [vmem:[#allocation9] sm:$0xff] }
  0x4b   :  { %470 = vmatprep.subr.bf16.mxu0 %v679_v0  ;;  %476 = vmatprep.subr.bf16.mxu1 %v679_v0  ;;  %v93_v3 = vld [vmem:[#allocation9 + $0x8] sm:$0xff]  ;;  %v87_v4 = vld [vmem:[#allocation8] sm:$0xff]  ;;  %v94_v7 = vld [vmem:[#allocation9 + $0x10] sm:$0xff]  ;;  %vm96_vm1 = vcmask 261120   ;;  %s682_s21 = smov 64   ;;  %s683_s24 = smov 32  }
  0x4c   :  { %451 = vmatprep.mubr.msk.f32.mxu0 %vm680_vm0, %v681_v1  ;;  %462 = vmatprep.mubr.msk.f32.mxu1 %vm680_vm0, %v681_v1  ;;  %v471_v5 = vpack.c.bf16 %v93_v3, %v92_v2  ;;  %v88_v6 = vld [vmem:[#allocation8 + $0x8] sm:$0xff]  ;;  %v95_v8 = vld [vmem:[#allocation9 + $0x18] sm:$0xff]  ;;  %v89_v10 = vld [vmem:[#allocation8 + $0x10] sm:$0xff]  ;;  %s685_s26 = smov [#allocation12]  }
  0x4d   :  { %v477_v9 = vpack.c.bf16 %v88_v6, %v87_v4  ;;  %v90_v11 = vld [vmem:[#allocation8 + $0x18] sm:$0xff]  ;;  %v474_v12 = vpack.c.bf16 %v95_v8, %v94_v7  ;;  %v86_v15 = vld [vmem:[#allocation3] sm:$0xff]  ;;  %s396_s0 = sshll.u32 %s685_s26, 4  ;;  %s397_s0 = int_to_ptr.vmem [resolvable:$true] %s396_s0 }
  0x4e   :  { %472 = vmatpush3.bf16.msra.mxu0 %v471_v5  ;;  %v480_v13 = vpack.c.bf16 %v90_v11, %v89_v10  ;;  %v91_v14 = vld [vmem:[#allocation6] sm:$0xff]  ;;  %v426_v18 = vld [vmem:[%s853_s5] ss:$0 sm:$0xff]  ;;  %s597_s16 = scalar_lea.vmem %s397_s0, 128  ;;  %p602_p5 = scmp.lt.s32.totalorder %s397_s0, %s397_s0 }
  0x4f   :  { %478 = vmatpush3.bf16.msra.mxu1 %v477_v9  ;;  %473 = vmatprep.subr.bf16.mxu0 %v679_v0  ;;  %v258_v24 = vld [vmem:[%s850_s2] sm:$0xff]  ;;  %s684_s2 = smov 96   ;;  %p598_p4 = scmp.ne.s32.totalorder %s397_s0, %s597_s16 }
  0x50   :  { %479 = vmatprep.subr.bf16.mxu1 %v679_v0  ;;  %v291_v41 = vld [vmem:[%s854_s6] sm:$0x1]  ;;  %p603_p6 = scmp.lt.s32.totalorder %s597_s16, %s597_s16 }
  0x52   :  { %475 = vmatpush3.bf16.msra.mxu0 %v474_v12  ;;  %p604_p7 = por %p603_p6, %p602_p5 }
  0x53   :  { %481 = vmatpush3.bf16.msra.mxu1 %v480_v13  ;;  %465 = vmatprep.subr.mxu0 %v681_v1 }
  0x54   :  { %p605_p8 = pnand %p604_p7, %p598_p4 }
  0x55   :  { %452 = vmatmul.mubr.msk.f32.vlgmr.msra.gmra.mrb[0].mxu0 %vm96_vm1, %v91_v14 }
  0x56   :  { %463 = vmatmul.mubr.msk.f32.vlgmr.msra.gmra.mrb[0].mxu1 %vm96_vm1, %v86_v15  ;;  %467 = vmatprep.mubr.msk.f32.mxu0 %vm680_vm0, %v681_v1 }
 0x128   :  { %v166_v16 = vpop.f32.mrb[0].mxu0 }
 0x129   :  { %v239_v17 = vpop.f32.mrb[0].mxu1  ;;  %v453_v19 = vpop.f32.mrb[1].mxu0 }
 0x12a   :  { %v240_v20 = vadd.f32 %v239_v17, %v166_v16  ;;  %v464_v21 = vpop.f32.mrb[1].mxu1 }
 0x12c   :  { %v250_v22 = vadd.f32 %v426_v18, %v240_v20 }
 0x12e   :  { %497 = vtanh.f32 %v250_v22  ;;  %v427_v25 = vmul.f32 -1.442695, %v250_v22 }
 0x130   :  { %499 = vpow2.f32 %v427_v25 }
 0x138   :  { %v498_v23 = vpop.eup %497 }
 0x139   :  { %265 = vrot.lane.b32.xlu0 %v498_v23, %s682_s21 }
 0x13a   :  { %v500_v26 = vpop.eup %499 }
 0x13b   :  { %v254_v27 = vadd.f32 1.0, %v500_v26 }
 0x13d   :  { %260 = vrot.lane.b32.xlu0 %v258_v24, %s683_s24  ;;  %501 = vrcp.f32 %v254_v27 }
 0x147   :  { %v502_v28 = vpop.eup %501 }
 0x1ab   :  { %v266_v29 = vpop.permute.xlu0 %265 }
 0x1ac   :  { %v268_v30 = vmul.f32 %v502_v28, %v266_v29 }
 0x1ae   :  { %270 = vrot.lane.b32.xlu1 %v268_v30, %s683_s24 }
 0x1af   :  { %v261_v31 = vpop.permute.xlu0 %260 }
 0x1b0   :  { %v263_v32 = vmul.f32 %v502_v28, %v261_v31 }
 0x220   :  { %v271_v33 = vpop.permute.xlu1 %270 }
 0x221   :  { %v273_v34 = vadd.f32 %v271_v33, %v263_v32 }
 0x223   :  { %503 = vtanh.f32 %v273_v34 }
 0x22d   :  { %v504_v35 = vpop.eup %503 }
 0x22e   :  { %276 = vrot.lane.b32.xlu1 %v504_v35, %s682_s21 }
 0x2a0   :  { %v277_v36 = vpop.permute.xlu1 %276 }
 0x2a1   :  { %v279_v37 = vmul.f32 %v502_v28, %v277_v36 }
 0x2a3   :  { %v290_v38 = vmax.f32 %v279_v37, 0.0  ;;  %286 = vrot.lane.b32.xlu1 %v279_v37, %s683_s24 }
 0x2a5   :  { %295 = vrot.lane.b32.xlu0 %v290_v38, %s683_s24 }
 0x2a9   :  { %281 = vrot.lane.b32.xlu0 %v273_v34, %s684_s2 }
 0x315   :  { %v287_v39 = vpop.permute.xlu1 %286 }
 0x316   :  { %289 = vst.msk [vmem:[#allocation12] sm:$0xff] %vm96_vm1, %v287_v39 }
 0x317   :  { %v296_v40 = vpop.permute.xlu0 %295 }
 0x318   :  { %466 = vmatpush3.xpose.msk.msra.mxu0 %vm96_vm1, %v296_v40 }
 0x31b   :  { %468 = vmatmul.mubr.msk.f32.vlgmr.msra.gmra.mrb[2].mxu0 %vm96_vm1, %v291_v41  ;;  %v282_v42 = vpop.permute.xlu0 %281 }
 0x31c   :  { %284 = vst.msk [vmem:[#allocation14] sm:$0xff] %vm96_vm1, %v282_v42 }
 0x31d   :  { %608 = shalt.err (!%p605_p8)
}
 0x31e   :  { %s609_s29 = scalar_lea.hbm %s857_s9, 128 }
 0x31f   :  { %p610_p9 = scmp.ne.s32.totalorder %s857_s9, %s609_s29  ;;  %p613_p10 = scmp.lt.u32.totalorder %s609_s29, %s857_s9 }
 0x321   :  { %p615_p11 = pnand %p613_p10, %p610_p9 }
 0x323   :  { %618 = shalt.err (!%p615_p11)
}
 0x324   :  { %399 = dma.vmem_to_hbm [thread:$0]  %s397_s0, 128, %s857_s9, [#allocation13]  }
 0x325   :  { %s686_s1 = smov [#allocation14]  }
 0x326   :  { %s406_s14 = sshll.u32 %s686_s1, 4  ;;  %s407_s14 = int_to_ptr.vmem [resolvable:$true] %s406_s14 }
 0x327   :  { %s619_s17 = scalar_lea.vmem %s407_s14, 128  ;;  %p624_p13 = scmp.lt.s32.totalorder %s407_s14, %s407_s14 }
 0x328   :  { %p620_p12 = scmp.ne.s32.totalorder %s407_s14, %s619_s17  ;;  %p625_p0 = scmp.lt.s32.totalorder %s619_s17, %s619_s17 }
 0x32a   :  { %p626_p1 = por %p625_p0, %p624_p13 }
 0x32c   :  { %p627_p2 = pnand %p626_p1, %p620_p12 }
 0x32e   :  { %630 = shalt.err (!%p627_p2)
}
 0x32f   :  { %s631_s18 = scalar_lea.hbm %s858_s10, 128 }
 0x330   :  { %p632_p3 = scmp.ne.s32.totalorder %s858_s10, %s631_s18  ;;  %p635_p4 = scmp.lt.u32.totalorder %s631_s18, %s858_s10 }
 0x332   :  { %p637_p5 = pnand %p635_p4, %p632_p3 }
 0x334   :  { %640 = shalt.err (!%p637_p5)
}
 0x335   :  { %409 = dma.vmem_to_hbm [thread:$0]  %s407_s14, 128, %s858_s10, [#allocation13]   ;;  %v293_v43 = vstv %s855_s7  ;;  %vm378_vm2 = vcmask 57344  }
 0x336   :  { %s687_s5 = smov [#allocation11]  }
 0x337   :  { %s386_s25 = sshll.u32 %s687_s5, 4  ;;  %s387_s25 = int_to_ptr.vmem [resolvable:$true] %s386_s25 }
 0x338   :  { %s641_s26 = scalar_lea.vmem %s387_s25, 16  ;;  %s645_s10 = scalar_lea.vmem %s387_s25, 32 }
 0x339   :  { %p642_p6 = scmp.ne.s32.totalorder %s387_s25, %s641_s26  ;;  %p646_p7 = scmp.lt.s32.totalorder %s387_s25, %s387_s25 }
 0x33a   :  { %p647_p8 = scmp.lt.s32.totalorder %s645_s10, %s641_s26 }
 0x33c   :  { %p648_p9 = por %p647_p8, %p646_p7 }
 0x33e   :  { %p649_p10 = pnand %p648_p9, %p642_p6 }
 0x3ee   :  { %v368_v44 = vpop.f32.mrb[2].mxu0 }
 0x3ef   :  { %v369_v45 = vadd.f32 %v368_v44, %v293_v43  ;;  %v469_v46 = vpop.f32.mrb[3].mxu0 }
 0x3f1   :  { %v430_v47 = vmul.f32 -1.442695, %v369_v45 }
 0x3f3   :  { %505 = vpow2.f32 %v430_v47 }
 0x3fd   :  { %v506_v48 = vpop.eup %505 }
 0x3fe   :  { %v375_v49 = vadd.f32 1.0, %v506_v48 }
 0x400   :  { %507 = vrcp.f32 %v375_v49 }
 0x40a   :  { %v508_v50 = vpop.eup %507 }
 0x40b   :  { %379 = vst.msk [vmem:[#allocation11] sm:$0x1] %vm378_vm2, %v508_v50 }
 0x40c   :  { %652 = shalt.err (!%p649_p10)
}
 0x40d   :  { %s653_s16 = scalar_lea.hbm %s856_s8, 16 }
 0x40e   :  { %p654_p11 = scmp.ne.s32.totalorder %s856_s8, %s653_s16  ;;  %p657_p12 = scmp.lt.u32.totalorder %s653_s16, %s856_s8 }
 0x410   :  { %p659_p13 = pnand %p657_p12, %p654_p11 }
 0x412   :  { %662 = shalt.err (!%p659_p13)
}
 0x413   :  { %389 = dma.vmem_to_hbm [thread:$0]  %s387_s25, 16, %s856_s8, [#allocation5]  }
 0x414   :  { %669 = dma.done.wait [#allocation5], 16  }
 0x415   :  { %670 = vsyncadd [#allocation5], 4294967280 }
 0x416   :  { %671 = dma.done.wait [#allocation13], 256  }
 0x417   :  { %672 = vsyncadd [#allocation13], 4294967040 }
 0x418   :  { %419 = vsyncpa [#allocation4], 1 }
 0x419   :  { %420 = vsyncpa [#allocation7], 1 }
 0x41a   :  { %421 = vsyncpa [#allocation10], 1 }
 0x41b   :  { %422 = vsyncpa [#allocation5], 1 }
 0x41c   :  { %423 = vsyncpa [#allocation13], 1 }

</bundles_post_ra>
